<compile_context>
chip_gen: v6e
topology: v6e:2x2x1
jax: 0.10.0
libtpu: 0.0.40
codegen_flags: <defaults>
</compile_context>

<pallas_src>
import numpy as np
import jax
import jax.numpy as jnp
from jax import lax
from jax.experimental import pallas as pl
from jax.experimental.pallas import tpu as pltpu

EPS = 1e-5
SLOPE = 0.2
ACT_DTYPE = jnp.bfloat16        # matmul operands + stored activations


def _round_up(x, m):
    return (x + m - 1) // m * m


def _vmem_cap_bytes():
    """Per-generation scoped-VMEM budget (leave headroom under physical)."""
    try:
        kind = jax.devices()[0].device_kind.lower()
    except Exception:
        kind = ""
    if "v7" in kind or "7x" in kind:
        return 48 << 20            # v7x: 64 MiB physical per core
    if "v4" in kind or "v5" in kind or "v6" in kind:
        return 96 << 20            # 128 MiB parts
    return 32 << 20                # unknown / older: stay conservative


def _mosaic_params(est_bytes, cap_bytes):
    kwargs = dict(dimension_semantics=("parallel",))
    if est_bytes > (16 << 20):     # only override when the default would bind
        kwargs["vmem_limit_bytes"] = int(min(cap_bytes, max(2 * est_bytes, 32 << 20)))
    return pltpu.CompilerParams(**kwargs)


def _pick_row_tiling(m_rows, tm_max):
    """Rows per tile: multiple of 16, <= tm_max, >= 2 grid steps when possible
    (so the parallel axis can shard across both v7x TensorCores)."""
    tm = min(tm_max, _round_up(m_rows, 16))
    if _round_up(m_rows, tm) // tm < 2 and tm >= 32:
        tm = _round_up((m_rows + 1) // 2, 16)
    m_pad = _round_up(m_rows, tm)
    return tm, m_pad, m_pad // tm


# ---------------- wrapper + kernels ----------------

def dcgan_upconv_forward(x, w_t, bias, gamma, beta):
    """x: (B, nin, H, W) NCHW.  w_t: (nin, nout, 4, 4) (PyTorch ConvTranspose2d
    weight layout).  Returns (B, nout, 2H, 2W) NCHW float32."""
    # A per-channel constant shifts the batch mean identically and cancels in
    # the (training-mode) BatchNorm that follows.  NOTE: if eval-mode running
    # stats were ever substituted, the bias must be re-added.
    del bias
    B, Ci, H, W = x.shape
    Co = w_t.shape[1]
    OH, OW = 2 * H, 2 * W
    Mq = B * H * W                   # one matmul row per *input* pixel
    K = 9 * Ci                       # zero-free 3x3 neighbourhood
    N = 4 * Co                       # 4 output phases fused into N

    # ---- glue: 3x3 im2col of the input (pad 1), channels-last, bf16.
    # TODO(synk): in-kernel tap accumulation (9 x (TM,Ci)x(Ci,N) matmuls over
    # overlapping windows of the padded input) would cut this 9x patch stream
    # to ~1x, but needs element-offset windows / manual DMA; kept in XLA here
    # for lowering robustness.
    x_nhwc = jnp.transpose(x, (0, 2, 3, 1)).astype(ACT_DTYPE)
    xpad = jnp.pad(x_nhwc, ((0, 0), (1, 1), (1, 1), (0, 0)))
    taps = [xpad[:, dy:dy + H, dx:dx + W, :]
            for dy in range(3) for dx in range(3)]
    patches = jnp.stack(taps, axis=3).reshape(Mq, K)        # (Mq, 9*Ci) bf16

    # ---- glue: phase-decomposed weight (9*Ci, 4*Co).  Output phase
    # (py, px) = (oy % 2, ox % 2) only touches taps with kh = py+1 (mod 2),
    # kw = px+1 (mod 2); that tap reads input offset (dy-1, dx-1) with
    # dy = (py + 3 - kh) // 2, dx = (px + 3 - kw) // 2.
    wp = jnp.zeros((9, Ci, 4, Co), jnp.float32)
    for py in range(2):
        for px in range(2):
            ph = py * 2 + px
            for kh in range(1 - py, 4, 2):
                dy = (py + 3 - kh) // 2
                for kw in range(1 - px, 4, 2):
                    dx = (px + 3 - kw) // 2
                    wp = wp.at[dy * 3 + dx, :, ph, :].set(w_t[:, :, kh, kw])
    w_mat = wp.reshape(K, N)

    # ---- lane folding: when 4*Co < 128 fold R input rows into the lane dim
    # via a block-diagonal weight, so every store is a full 128-lane vst.
    if N < 128 and 128 % N == 0 and Mq % (128 // N) == 0:
        R = 128 // N
    else:
        R = 1
    L = R * N
    Kp = R * K
    Mrows = Mq // R                                   # valid (folded) rows

    lhs = patches.reshape(Mrows, Kp)
    w_big = w_mat if R == 1 else jnp.kron(jnp.eye(R, dtype=jnp.float32), w_mat)
    w_big = w_big.astype(ACT_DTYPE)

    # ---- tiling & VMEM budget (per generation).
    cap = _vmem_cap_bytes()
    tm_max = 2048 if cap >= (96 << 20) else 1024
    TM, Mpad, G = _pick_row_tiling(Mrows, tm_max)

    def conv_vmem_est(tm):
        # double-buffered bf16 LHS/RHS/activation + tiny f32 stats blocks
        return 2 * (tm * Kp + Kp * L + tm * L) * 2 + 4 * 2 * L * 4

    # TODO(synk): for very large Ci*Co a K-reduction grid axis ("arbitrary",
    # f32 accumulator scratch) would keep TM large; here we shrink TM instead.
    while TM > 64 and TM % 32 == 0 and conv_vmem_est(TM) > int(0.9 * cap):
        TM //= 2
    Mpad = _round_up(Mrows, TM)
    G = Mpad // TM

    lhs = jnp.pad(lhs, ((0, Mpad - Mrows), (0, 0)))   # zero rows -> zero y rows

    # ---- kernel 1: (TM, Kp) @ (Kp, L) on the MXU (f32 accumulate), bf16
    # activation store, plus per-tile sum and mean-centred SSQ per column.
    def conv_stats_kernel(p_ref, w_ref, o_ref, psum_ref, pm2_ref):
        y = jnp.dot(p_ref[...], w_ref[...], preferred_element_type=jnp.float32)
        o_ref[...] = y.astype(o_ref.dtype)
        start = pl.program_id(0) * TM
        cnt = jnp.maximum(jnp.minimum(Mrows - start, TM), 1).astype(jnp.float32)
        s = jnp.sum(y, axis=0)                        # padded rows are exactly 0
        mu = s / cnt
        row_ok = (lax.broadcasted_iota(jnp.int32, (TM, 1), 0) + start) < Mrows
        d = jnp.where(row_ok, y - mu[None, :], 0.0)
        psum_ref[...] = s[None, None, :]
        pm2_ref[...] = jnp.sum(d * d, axis=0)[None, None, :]

    conv_out, psum, pm2 = pl.pallas_call(
        conv_stats_kernel,
        out_shape=(
            jax.ShapeDtypeStruct((Mpad, L), ACT_DTYPE),
            jax.ShapeDtypeStruct((G, 1, L), jnp.float32),
            jax.ShapeDtypeStruct((G, 1, L), jnp.float32),
        ),
        grid=(G,),
        in_specs=[
            pl.BlockSpec((TM, Kp), lambda i: (i, 0)),
            # TODO(synk): pipeline_mode=pl.Buffered(1) would single-buffer this
            # constant weight block (VMEM savings on v7x); left at the default
            # for lowering robustness.
            pl.BlockSpec((Kp, L), lambda i: (0, 0)),
        ],
        out_specs=(
            pl.BlockSpec((TM, L), lambda i: (i, 0)),
            pl.BlockSpec((1, 1, L), lambda i: (i, 0, 0)),
            pl.BlockSpec((1, 1, L), lambda i: (i, 0, 0)),
        ),
        compiler_params=_mosaic_params(conv_vmem_est(TM), cap),
    )(lhs, w_big)

    # ---- O(Co) stats fold (plain JAX): exact pooled-variance identity
    #   M2_total = sum_g M2_g + sum_g n_g * (mean_g - mean)^2
    # over the (tile, fold-slot, phase) groups of every channel.
    count = float(4 * Mq)
    n_g = jnp.clip(Mrows - jnp.arange(G) * TM, 0, TM).astype(jnp.float32)
    sums = psum.reshape(G, R * 4, Co)
    m2s = pm2.reshape(G, R * 4, Co)
    n_w = jnp.maximum(n_g, 1.0)[:, None, None]
    mean = sums.sum(axis=(0, 1)) / count
    means_g = sums / n_w
    m2 = m2s.sum(axis=(0, 1)) + (n_g[:, None, None] * (means_g - mean) ** 2).sum(axis=(0, 1))
    var = jnp.maximum(m2 / count, 0.0)               # biased (BatchNorm training)
    scale = gamma * lax.rsqrt(var + EPS)
    shift = beta - mean * scale

    # ---- kernel 2: fused BN affine + LeakyReLU, bf16 in / bf16 out, aliased
    # onto the conv activation buffer, with its own row tile (~<= 2 MiB).
    scale_row = jnp.tile(scale, L // Co).reshape(1, L).astype(jnp.float32)
    shift_row = jnp.tile(shift, L // Co).reshape(1, L).astype(jnp.float32)

    TB = TM
    while TB >= 32 and TB % 32 == 0 and TB * L * 2 > (2 << 20):
        TB //= 2
    GB = Mpad // TB

    def bn_lrelu_kernel(y_ref, sc_ref, sh_ref, o_ref):
        y = y_ref[...].astype(jnp.float32) * sc_ref[...] + sh_ref[...]
        o_ref[...] = jnp.where(y >= 0, y, SLOPE * y).astype(o_ref.dtype)

    bn_est = 2 * (2 * TB * L * 2 + 2 * L * 4)
    out_flat = pl.pallas_call(
        bn_lrelu_kernel,
        out_shape=jax.ShapeDtypeStruct((Mpad, L), ACT_DTYPE),
        grid=(GB,),
        in_specs=[
            pl.BlockSpec((TB, L), lambda i: (i, 0)),
            pl.BlockSpec((1, L), lambda i: (0, 0)),
            pl.BlockSpec((1, L), lambda i: (0, 0)),
        ],
        out_specs=pl.BlockSpec((TB, L), lambda i: (i, 0)),
        input_output_aliases={0: 0},                 # reuse conv_out's buffer
        compiler_params=_mosaic_params(bn_est, cap),
    )(conv_out, scale_row, shift_row)

    # ---- depth-to-space + NCHW (bf16 pass; f32 cast fused into its output).
    # TODO(synk): skip this transpose entirely when the next layer can consume
    # the (B, H, 2, W, 2, Co) / NHWC layout directly.
    out = out_flat.reshape(Mpad * R, N)[:Mq]
    out = out.reshape(B, H, W, 2, 2, Co)
    out = jnp.transpose(out, (0, 5, 1, 3, 2, 4)).reshape(B, Co, OH, OW)
    return out.astype(jnp.float32)


# ---------------- pure numpy reference (for verification) ----------------

def ref_forward(x, w_t, bias, gamma, beta):
    B, Ci, H, W = x.shape
    Co = w_t.shape[1]
    OH, OW = 2 * H, 2 * W
    out = np.zeros((B, Co, OH, OW), np.float32)
    # out[n,co,y,x] += x[n,ci,ih,iw] * w_t[ci,co,kh,kw], y=2*ih-1+kh, x=2*iw-1+kw
    for kh in range(4):
        for kw in range(4):
            for ih in range(H):
                y = 2 * ih - 1 + kh
                if not (0 <= y < OH):
                    continue
                for iw in range(W):
                    xx = 2 * iw - 1 + kw
                    if not (0 <= xx < OW):
                        continue
                    out[:, :, y, xx] += np.einsum(
                        'bc,cd->bd', x[:, :, ih, iw], w_t[:, :, kh, kw])
    out += bias[None, :, None, None]
    mean = out.mean(axis=(0, 2, 3))
    var = out.var(axis=(0, 2, 3))
    norm = (out - mean[None, :, None, None]) / np.sqrt(
        var[None, :, None, None] + EPS)
    bn = norm * gamma[None, :, None, None] + beta[None, :, None, None]
    return np.where(bn >= 0, bn, SLOPE * bn)


# ---------------- main ----------------

def _run_case(B, nin, nout, H, W, case_id):
    key = jax.random.fold_in(jax.random.PRNGKey(0), case_id)
    kx, kw, kb = jax.random.split(key, 3)
    x = jax.random.normal(kx, (B, nin, H, W), jnp.float32)

    bound = 1.0 / np.sqrt(nin * 16)
    w_t = jax.random.uniform(kw, (nin, nout, 4, 4), jnp.float32, -bound, bound)
    bias = jax.random.uniform(kb, (nout,), jnp.float32, -bound, bound)
    gamma = jnp.ones((nout,), jnp.float32)    # BatchNorm2d default weight
    beta = jnp.zeros((nout,), jnp.float32)    # BatchNorm2d default bias

    out = jax.jit(dcgan_upconv_forward)(x, w_t, bias, gamma, beta)
    out = jax.block_until_ready(out)
    assert out.shape == (B, nout, 2 * H, 2 * W)

    ref = ref_forward(np.asarray(x), np.asarray(w_t), np.asarray(bias),
                      np.asarray(gamma), np.asarray(beta))
    # bf16 matmul operands + bf16 activation/output stores (f32 accumulate &
    # stats) -> ~1% relative error on the normalized output; 4e-2 still
    # catches any structural bug.
    np.testing.assert_allclose(np.asarray(out), ref, rtol=4e-2, atol=4e-2)


if __name__ == "__main__":
    # primary config (lane-folded path, R = 4, fully valid tiles)
    _run_case(B=2, nin=4, nout=8, H=16, W=16, case_id=0)
    # odd-shaped config: exercises R = 1 fallback, row padding, masked stats
    _run_case(B=2, nin=3, nout=5, H=10, W=10, case_id=1)
    print("KERNEL_OK")
</pallas_src>

<mosaic_0001>
module attributes {stable_mosaic.version = 11 : i64} {
  func.func @conv_stats_kernel(%arg0: i32, %arg1: memref<64x144xbf16, #tpu.memory_space<vmem>>, %arg2: memref<144x128xbf16, #tpu.memory_space<vmem>>, %arg3: memref<64x128xbf16, #tpu.memory_space<vmem>>, %arg4: memref<1x1x128xf32, #tpu.memory_space<vmem>>, %arg5: memref<1x1x128xf32, #tpu.memory_space<vmem>>) attributes {dimension_semantics = [#tpu.dimension_semantics<parallel>], iteration_bounds = array<i64: 2>, scalar_prefetch = 0 : i64, scratch_operands = 0 : i64, tpu.core_type = #tpu.core_type<tc>, window_params = [{transform_indices = @transform_0, window_bounds = array<i64: 64, 144>}, {pipeline_mode = #tpu.pipeline_mode<synchronous>, transform_indices = @transform_1, window_bounds = array<i64: 144, 128>}, {transform_indices = @transform_2, window_bounds = array<i64: 64, 128>}, {transform_indices = @transform_3, window_bounds = array<i64: 1, 1, 128>}, {transform_indices = @transform_4, window_bounds = array<i64: 1, 1, 128>}]} {
    %c0 = arith.constant 0 : index
    %c0_0 = arith.constant 0 : index
    %0 = vector.load %arg1[%c0, %c0_0] : memref<64x144xbf16, #tpu.memory_space<vmem>>, vector<64x144xbf16>
    %c0_1 = arith.constant 0 : index
    %c0_2 = arith.constant 0 : index
    %1 = vector.load %arg2[%c0_1, %c0_2] : memref<144x128xbf16, #tpu.memory_space<vmem>>, vector<144x128xbf16>
    %cst = arith.constant dense<0.000000e+00> : vector<64x128xf32>
    %2 = tpu.matmul %0, %1, %cst {dimension_numbers = #tpu.dot_dimension_numbers<[1], [0], [0], [1], [0, 0, 1, 1], [], []>} : vector<64x144xbf16>, vector<144x128xbf16>, vector<64x128xf32> -> vector<64x128xf32>
    %3 = arith.truncf %2 : vector<64x128xf32> to vector<64x128xbf16>
    %c0_3 = arith.constant 0 : index
    %c0_4 = arith.constant 0 : index
    %4 = vector.load %arg3[%c0_3, %c0_4] : memref<64x128xbf16, #tpu.memory_space<vmem>>, vector<64x128xbf16>
    tpu.vector_store %arg3[%c0_3, %c0_4], %3 {strides = array<i32>} : memref<64x128xbf16, #tpu.memory_space<vmem>>, vector<64x128xbf16>,
    %c64_i32 = arith.constant 64 : i32
    %5 = arith.muli %arg0, %c64_i32 : i32
    %c128_i32 = arith.constant 128 : i32
    %6 = arith.subi %c128_i32, %5 : i32
    %c64_i32_5 = arith.constant 64 : i32
    %7 = arith.minsi %6, %c64_i32_5 : i32
    %c1_i32 = arith.constant 1 : i32
    %8 = arith.maxsi %7, %c1_i32 : i32
    %9 = arith.sitofp %8 : i32 to f32
    %cst_6 = arith.constant dense<0.000000e+00> : vector<128xf32>
    %10 = vector.multi_reduction <add>, %2, %cst_6 [0] : vector<64x128xf32> to vector<128xf32>
    %11 = vector.broadcast %9 : f32 to vector<128xf32>
    %12 = arith.divf %10, %11 : vector<128xf32>
    %13 = tpu.iota {dimensions = array<i32: 0>} : vector<64x1xi32>
    %14 = vector.broadcast %5 : i32 to vector<64x1xi32>
    %15 = arith.addi %13, %14 : vector<64x1xi32>
    %c128_i32_7 = arith.constant 128 : i32
    %16 = vector.broadcast %c128_i32_7 : i32 to vector<64x1xi32>
    %17 = arith.cmpi slt, %15, %16 : vector<64x1xi32>
    %18 = vector.shape_cast %12 : vector<128xf32> to vector<1x128xf32>
    %19 = vector.broadcast %18 : vector<1x128xf32> to vector<64x128xf32>
    %20 = arith.subf %2, %19 : vector<64x128xf32>
    %cst_8 = arith.constant 0.000000e+00 : f32
    %21 = vector.shape_cast %17 : vector<64x1xi1> to vector<64x1xi1>
    %22 = vector.broadcast %21 : vector<64x1xi1> to vector<64x128xi1>
    %23 = vector.broadcast %cst_8 : f32 to vector<64x128xf32>
    %24 = arith.select %22, %20, %23 : vector<64x128xi1>, vector<64x128xf32>
    %25 = vector.shape_cast %10 : vector<128xf32> to vector<1x1x128xf32>
    %c0_9 = arith.constant 0 : index
    %c0_10 = arith.constant 0 : index
    %c0_11 = arith.constant 0 : index
    %26 = vector.load %arg4[%c0_9, %c0_10, %c0_11] : memref<1x1x128xf32, #tpu.memory_space<vmem>>, vector<1x1x128xf32>
    tpu.vector_store %arg4[%c0_9, %c0_10, %c0_11], %25 {strides = array<i32>} : memref<1x1x128xf32, #tpu.memory_space<vmem>>, vector<1x1x128xf32>,
    %27 = arith.mulf %24, %24 : vector<64x128xf32>
    %cst_12 = arith.constant dense<0.000000e+00> : vector<128xf32>
    %28 = vector.multi_reduction <add>, %27, %cst_12 [0] : vector<64x128xf32> to vector<128xf32>
    %29 = vector.shape_cast %28 : vector<128xf32> to vector<1x1x128xf32>
    %c0_13 = arith.constant 0 : index
    %c0_14 = arith.constant 0 : index
    %c0_15 = arith.constant 0 : index
    %30 = vector.load %arg5[%c0_13, %c0_14, %c0_15] : memref<1x1x128xf32, #tpu.memory_space<vmem>>, vector<1x1x128xf32>
    tpu.vector_store %arg5[%c0_13, %c0_14, %c0_15], %29 {strides = array<i32>} : memref<1x1x128xf32, #tpu.memory_space<vmem>>, vector<1x1x128xf32>,
    return
  }
  func.func @transform_0(%arg0: i32) -> (i32, i32) {
    %c0_i32 = arith.constant 0 : i32
    %c0_i32_0 = arith.constant 0 : i32
    return %arg0, %c0_i32 : i32, i32
  }
  func.func @transform_1(%arg0: i32) -> (i32, i32) {
    %c0_i32 = arith.constant 0 : i32
    %c0_i32_0 = arith.constant 0 : i32
    %c0_i32_1 = arith.constant 0 : i32
    return %c0_i32, %c0_i32_0 : i32, i32
  }
  func.func @transform_2(%arg0: i32) -> (i32, i32) {
    %c0_i32 = arith.constant 0 : i32
    %c0_i32_0 = arith.constant 0 : i32
    return %arg0, %c0_i32 : i32, i32
  }
  func.func @transform_3(%arg0: i32) -> (i32, i32, i32) {
    %c0_i32 = arith.constant 0 : i32
    %c0_i32_0 = arith.constant 0 : i32
    %c0_i32_1 = arith.constant 0 : i32
    return %arg0, %c0_i32, %c0_i32_0 : i32, i32, i32
  }
  func.func @transform_4(%arg0: i32) -> (i32, i32, i32) {
    %c0_i32 = arith.constant 0 : i32
    %c0_i32_0 = arith.constant 0 : i32
    %c0_i32_1 = arith.constant 0 : i32
    return %arg0, %c0_i32, %c0_i32_0 : i32, i32, i32
  }
}

module attributes {stable_mosaic.version = 11 : i64} {
  func.func @bn_lrelu_kernel(%arg0: i32, %arg1: memref<64x128xbf16, #tpu.memory_space<vmem>>, %arg2: memref<1x128xf32, #tpu.memory_space<vmem>>, %arg3: memref<1x128xf32, #tpu.memory_space<vmem>>, %arg4: memref<64x128xbf16, #tpu.memory_space<vmem>>) attributes {dimension_semantics = [#tpu.dimension_semantics<parallel>], iteration_bounds = array<i64: 2>, scalar_prefetch = 0 : i64, scratch_operands = 0 : i64, tpu.core_type = #tpu.core_type<tc>, window_params = [{transform_indices = @transform_0, window_bounds = array<i64: 64, 128>}, {pipeline_mode = #tpu.pipeline_mode<synchronous>, transform_indices = @transform_1, window_bounds = array<i64: 1, 128>}, {pipeline_mode = #tpu.pipeline_mode<synchronous>, transform_indices = @transform_2, window_bounds = array<i64: 1, 128>}, {transform_indices = @transform_3, window_bounds = array<i64: 64, 128>}]} {
    %c0 = arith.constant 0 : index
    %c0_0 = arith.constant 0 : index
    %0 = vector.load %arg1[%c0, %c0_0] : memref<64x128xbf16, #tpu.memory_space<vmem>>, vector<64x128xbf16>
    %1 = arith.extf %0 : vector<64x128xbf16> to vector<64x128xf32>
    %c0_1 = arith.constant 0 : index
    %c0_2 = arith.constant 0 : index
    %2 = vector.load %arg2[%c0_1, %c0_2] : memref<1x128xf32, #tpu.memory_space<vmem>>, vector<1x128xf32>
    %3 = vector.broadcast %2 : vector<1x128xf32> to vector<64x128xf32>
    %4 = arith.mulf %1, %3 : vector<64x128xf32>
    %c0_3 = arith.constant 0 : index
    %c0_4 = arith.constant 0 : index
    %5 = vector.load %arg3[%c0_3, %c0_4] : memref<1x128xf32, #tpu.memory_space<vmem>>, vector<1x128xf32>
    %6 = vector.broadcast %5 : vector<1x128xf32> to vector<64x128xf32>
    %7 = arith.addf %4, %6 : vector<64x128xf32>
    %cst = arith.constant 0.000000e+00 : f32
    %8 = vector.broadcast %cst : f32 to vector<64x128xf32>
    %9 = arith.cmpf oge, %7, %8 : vector<64x128xf32>
    %cst_5 = arith.constant 2.000000e-01 : f32
    %10 = vector.broadcast %cst_5 : f32 to vector<64x128xf32>
    %11 = arith.mulf %10, %7 : vector<64x128xf32>
    %12 = arith.select %9, %7, %11 : vector<64x128xi1>, vector<64x128xf32>
    %13 = arith.truncf %12 : vector<64x128xf32> to vector<64x128xbf16>
    %c0_6 = arith.constant 0 : index
    %c0_7 = arith.constant 0 : index
    %14 = vector.load %arg4[%c0_6, %c0_7] : memref<64x128xbf16, #tpu.memory_space<vmem>>, vector<64x128xbf16>
    tpu.vector_store %arg4[%c0_6, %c0_7], %13 {strides = array<i32>} : memref<64x128xbf16, #tpu.memory_space<vmem>>, vector<64x128xbf16>,
    return
  }
  func.func @transform_0(%arg0: i32) -> (i32, i32) {
    %c0_i32 = arith.constant 0 : i32
    %c0_i32_0 = arith.constant 0 : i32
    return %arg0, %c0_i32 : i32, i32
  }
  func.func @transform_1(%arg0: i32) -> (i32, i32) {
    %c0_i32 = arith.constant 0 : i32
    %c0_i32_0 = arith.constant 0 : i32
    %c0_i32_1 = arith.constant 0 : i32
    return %c0_i32, %c0_i32_0 : i32, i32
  }
  func.func @transform_2(%arg0: i32) -> (i32, i32) {
    %c0_i32 = arith.constant 0 : i32
    %c0_i32_0 = arith.constant 0 : i32
    %c0_i32_1 = arith.constant 0 : i32
    return %c0_i32, %c0_i32_0 : i32, i32
  }
  func.func @transform_3(%arg0: i32) -> (i32, i32) {
    %c0_i32 = arith.constant 0 : i32
    %c0_i32_0 = arith.constant 0 : i32
    return %arg0, %c0_i32 : i32, i32
  }
}

</mosaic_0001>

<bundles_post_ra>
// kernel: mul.4
= control target key start
LH: loop header
LB: loop body
LE: loop exit
PB: predicated region body
PF: predicated region fallthrough
CT: control target
= control target key end

     0   :  { %s466_s2 = smov 24   ;;  %vm183_vm0 = vcmask 1047556   ;;  %vm185_vm1 = vcmask 64512   ;;  %vm227_vm2 = vcmask 261312   ;;  %vm279_vm3 = vcmask 195712   ;;  %s687_s0 = inlined_call_operand.vmem [shape: f32[9,4,4,8], index: 0, kind: input, shape index: {}]   ;;  %s688_s1 = inlined_call_operand.vmem [shape: f32[36,32], index: 1, kind: output, shape index: {}]  }
   0x1   :  { %v413_v0 = vld [vmem:[%s687_s0 + $0x7c] sm:$0xf]  ;;  %v414_v1 = vld [vmem:[%s687_s0 + $0x78] sm:$0xf]  ;;  %v415_v2 = vld [vmem:[%s687_s0 + $0x74] sm:$0xf] }
   0x2   :  { %29 = vst [vmem:[#allocation0 + $0xf8] sm:$0xf] %v413_v0  ;;  %34 = vst [vmem:[#allocation0 + $0xf0] sm:$0xf] %v414_v1  ;;  %v416_v3 = vld [vmem:[%s687_s0 + $0x70] sm:$0xf] }
   0x3   :  { %39 = vst [vmem:[#allocation0 + $0xe8] sm:$0xf] %v415_v2  ;;  %v425_v4 = vld [vmem:[%s687_s0 + $0x4c] sm:$0xf]  ;;  %44 = vst [vmem:[#allocation0 + $0xe0] sm:$0xf] %v416_v3 }
   0x4   :  { %89 = vst [vmem:[#allocation0 + $0x98] sm:$0xf] %v425_v4  ;;  %v426_v5 = vld [vmem:[%s687_s0 + $0x48] sm:$0xf]  ;;  %v427_v6 = vld [vmem:[%s687_s0 + $0x44] sm:$0xf] }
   0x5   :  { %v428_v7 = vld [vmem:[%s687_s0 + $0x40] sm:$0xf]  ;;  %94 = vst [vmem:[#allocation0 + $0x90] sm:$0xf] %v426_v5  ;;  %99 = vst [vmem:[#allocation0 + $0x88] sm:$0xf] %v427_v6 }
   0x6   :  { %104 = vst [vmem:[#allocation0 + $0x80] sm:$0xf] %v428_v7  ;;  %v429_v8 = vld [vmem:[%s687_s0 + $0x3c] sm:$0xf]  ;;  %v430_v9 = vld [vmem:[%s687_s0 + $0x38] sm:$0xf] }
   0x7   :  { %v431_v10 = vld [vmem:[%s687_s0 + $0x34] sm:$0xf]  ;;  %109 = vst [vmem:[#allocation0 + $0x78] sm:$0xf] %v429_v8  ;;  %114 = vst [vmem:[#allocation0 + $0x70] sm:$0xf] %v430_v9 }
   0x8   :  { %119 = vst [vmem:[#allocation0 + $0x68] sm:$0xf] %v431_v10  ;;  %v432_v11 = vld [vmem:[%s687_s0 + $0x30] sm:$0xf]  ;;  %v437_v12 = vld [vmem:[%s687_s0 + $0x1c] sm:$0xf] }
   0x9   :  { %v438_v13 = vld [vmem:[%s687_s0 + $0x18] sm:$0xf]  ;;  %124 = vst [vmem:[#allocation0 + $0x60] sm:$0xf] %v432_v11  ;;  %149 = vst [vmem:[#allocation0 + $0x38] sm:$0xf] %v437_v12 }
   0xa   :  { %154 = vst [vmem:[#allocation0 + $0x30] sm:$0xf] %v438_v13  ;;  %v439_v14 = vld [vmem:[%s687_s0 + $0x14] sm:$0xf]  ;;  %v440_v15 = vld [vmem:[%s687_s0 + $0x10] sm:$0xf] }
   0xb   :  { %v441_v16 = vld [vmem:[%s687_s0 + $0xc] sm:$0xf]  ;;  %159 = vst [vmem:[#allocation0 + $0x28] sm:$0xf] %v439_v14  ;;  %164 = vst [vmem:[#allocation0 + $0x20] sm:$0xf] %v440_v15 }
   0xc   :  { %169 = vst [vmem:[#allocation0 + $0x18] sm:$0xf] %v441_v16  ;;  %v442_v17 = vld [vmem:[%s687_s0 + $0x8] sm:$0xf]  ;;  %v443_v18 = vld [vmem:[%s687_s0 + $0x4] sm:$0xf] }
   0xd   :  { %v179_v19 = vld [vmem:[%s687_s0] sm:$0xf]  ;;  %174 = vst [vmem:[#allocation0 + $0x10] sm:$0xf] %v442_v17  ;;  %178 = vst [vmem:[#allocation0 + $0x8] sm:$0xf] %v443_v18 }
   0xe   :  { %180 = vst [vmem:[#allocation0] sm:$0xf] %v179_v19  ;;  %v417_v20 = vld [vmem:[%s687_s0 + $0x6c] sm:$0xf]  ;;  %v418_v21 = vld [vmem:[%s687_s0 + $0x68] sm:$0xf] }
   0xf   :  { %v419_v22 = vld [vmem:[%s687_s0 + $0x64] sm:$0xf]  ;;  %49 = vst [vmem:[#allocation0 + $0xd8] sm:$0xf] %v417_v20  ;;  %54 = vst [vmem:[#allocation0 + $0xd0] sm:$0xf] %v418_v21 }
  0x10   :  { %59 = vst [vmem:[#allocation0 + $0xc8] sm:$0xf] %v419_v22  ;;  %v420_v23 = vld [vmem:[%s687_s0 + $0x60] sm:$0xf]  ;;  %v421_v24 = vld [vmem:[%s687_s0 + $0x5c] sm:$0xf] }
  0x11   :  { %v422_v25 = vld [vmem:[%s687_s0 + $0x58] sm:$0xf]  ;;  %64 = vst [vmem:[#allocation0 + $0xc0] sm:$0xf] %v420_v23  ;;  %69 = vst [vmem:[#allocation0 + $0xb8] sm:$0xf] %v421_v24 }
  0x12   :  { %v265_v26 = vld [vmem:[#allocation0 + $0xe3] ss:$8 sm:$0xf]   ;;  %74 = vst [vmem:[#allocation0 + $0xb0] sm:$0xf] %v422_v25  ;;  %vm331_vm4 = vcmask 130112  }
  0x13   :  { %v423_v27 = vld [vmem:[%s687_s0 + $0x54] sm:$0xf]  ;;  %266 = vrot.lane.b32.xlu0 %v265_v26, %s466_s2  ;;  %v245_v28 = vld [vmem:[#allocation0 + $0x63] ss:$8 sm:$0xf0]  }
  0x14   :  { %79 = vst [vmem:[#allocation0 + $0xa8] sm:$0xf] %v423_v27  ;;  %v424_v29 = vld [vmem:[%s687_s0 + $0x50] sm:$0xf]  ;;  %v409_v30 = vld [vmem:[%s687_s0 + $0x8c] sm:$0xf] }
  0x15   :  { %84 = vst [vmem:[#allocation0 + $0xa0] sm:$0xf] %v424_v29  ;;  %v410_v31 = vld [vmem:[%s687_s0 + $0x88] sm:$0xf]  ;;  %v411_v32 = vld [vmem:[%s687_s0 + $0x84] sm:$0xf] }
  0x16   :  { %v243_v33 = vld [vmem:[#allocation0 + $0x63] ss:$8 sm:$0xf]   ;;  %9 = vst [vmem:[#allocation0 + $0x118] sm:$0xf] %v409_v30 }
  0x17   :  { %14 = vst [vmem:[#allocation0 + $0x110] sm:$0xf] %v410_v31  ;;  %19 = vst [vmem:[#allocation0 + $0x108] sm:$0xf] %v411_v32  ;;  %v412_v34 = vld [vmem:[%s687_s0 + $0x80] sm:$0xf]  ;;  %v247_v35 = vsel %vm183_vm0, %v245_v28, %v243_v33 }
  0x18   :  { %v222_v36 = vld [vmem:[#allocation0 + $0x3] ss:$8 sm:$0xf0]   ;;  %24 = vst [vmem:[#allocation0 + $0x100] sm:$0xf] %v412_v34  ;;  %248 = vrot.lane.b32.xlu1 %v247_v35, %s466_s2 }
  0x19   :  { %v433_v37 = vld [vmem:[%s687_s0 + $0x2c] sm:$0xf]  ;;  %v220_v38 = vld [vmem:[#allocation0 + $0x3] ss:$8 sm:$0xf]  }
  0x1a   :  { %129 = vst [vmem:[#allocation0 + $0x58] sm:$0xf] %v433_v37  ;;  %v434_v39 = vld [vmem:[%s687_s0 + $0x28] sm:$0xf]  ;;  %v224_v40 = vsel %vm183_vm0, %v222_v36, %v220_v38  ;;  %v435_v41 = vld [vmem:[%s687_s0 + $0x24] sm:$0xf] }
  0x1b   :  { %134 = vst [vmem:[#allocation0 + $0x50] sm:$0xf] %v434_v39  ;;  %v436_v42 = vld [vmem:[%s687_s0 + $0x20] sm:$0xf]  ;;  %225 = vrot.lane.b32.xlu0 %v224_v40, %s466_s2  ;;  %139 = vst [vmem:[#allocation0 + $0x48] sm:$0xf] %v435_v41 }
  0x1c   :  { %v256_v43 = vld [vmem:[#allocation0 + $0xa3] ss:$8 sm:$0xf0]   ;;  %144 = vst [vmem:[#allocation0 + $0x40] sm:$0xf] %v436_v42  ;;  %s467_s0 = smov 16  }
  0x1d   :  { %v272_v44 = vld [vmem:[#allocation0 + $0x2] ss:$8 sm:$0xf]   ;;  %v254_v45 = vld [vmem:[#allocation0 + $0xa3] ss:$8 sm:$0xf]  }
  0x1e   :  { %v274_v46 = vld [vmem:[#allocation0 + $0x2] ss:$8 sm:$0xf0]   ;;  %v258_v47 = vsel %vm183_vm0, %v256_v43, %v254_v45  ;;  %v206_v61 = vld [vmem:[#allocation0 + $0xc0] ss:$8 sm:$0xf]  }
  0x1f   :  { %259 = vrot.lane.b32.xlu1 %v258_v47, %s466_s2  ;;  %v230_v48 = vld [vmem:[#allocation0 + $0x103] ss:$8 sm:$0xf]   ;;  %v276_v49 = vsel %vm183_vm0, %v274_v46, %v272_v44  ;;  %v295_v50 = vld [vmem:[#allocation0 + $0x62] ss:$8 sm:$0xf]  }
  0x20   :  { %v282_v51 = vld [vmem:[#allocation0 + $0x102] ss:$8 sm:$0xf]   ;;  %v208_v62 = vld [vmem:[#allocation0 + $0xc0] ss:$8 sm:$0xf0]  }
  0x21   :  { %v297_v52 = vld [vmem:[#allocation0 + $0x62] ss:$8 sm:$0xf0]   ;;  %v334_v63 = vld [vmem:[#allocation0 + $0x101] ss:$8 sm:$0xf]   ;;  %v210_v1 = vsel %vm183_vm0, %v208_v62, %v206_v61 }
  0x22   :  { %v299_v56 = vsel %vm183_vm0, %v297_v52, %v295_v50  ;;  %v306_v58 = vld [vmem:[#allocation0 + $0xa2] ss:$8 sm:$0xf]   ;;  %v190_v3 = vld [vmem:[#allocation0 + $0x40] ss:$8 sm:$0xf0]  }
  0x23   :  { %v232_v53 = vld [vmem:[#allocation0 + $0x23] ss:$8 sm:$0xf0]   ;;  %v284_v54 = vld [vmem:[#allocation0 + $0x22] ss:$8 sm:$0xf0]   ;;  %277 = vrot.lane.b32.xlu1 %v276_v49, %s467_s0 }
  0x24   :  { %v234_v55 = vsel %vm183_vm0, %v232_v53, %v230_v48  ;;  %v286_v57 = vsel %vm183_vm0, %v284_v54, %v282_v51  ;;  %v308_v59 = vld [vmem:[#allocation0 + $0xa2] ss:$8 sm:$0xf0]   ;;  %v336_v0 = vld [vmem:[#allocation0 + $0x21] ss:$8 sm:$0xf0]  }
  0x25   :  { %235 = vrot.lane.b32.xlu0 %v234_v55, %s466_s2  ;;  %v317_v60 = vld [vmem:[#allocation0 + $0xe2] ss:$8 sm:$0xf]   ;;  %v188_v2 = vld [vmem:[#allocation0 + $0x40] ss:$8 sm:$0xf]   ;;  %v310_v8 = vsel %vm183_vm0, %v308_v59, %v306_v58  ;;  %v338_v15 = vsel %vm183_vm0, %v336_v0, %v334_v63 }
  0x26   :  { %v324_v4 = vld [vmem:[#allocation0 + $0x1] ss:$8 sm:$0xf]   ;;  %446 = vst.msk [vmem:[%s688_s1 + $0x18] sm:$0xff] %vm185_vm1, %v210_v1   ;;  %v192_v5 = vsel %vm183_vm0, %v190_v3, %v188_v2  ;;  %s468_s2 = smov 8  }
  0x27   :  { %300 = vrot.lane.b32.xlu1 %v299_v56, %s467_s0  ;;  %v197_v6 = vld [vmem:[#allocation0 + $0x80] ss:$8 sm:$0xf]   ;;  %444 = vst.msk [vmem:[%s688_s1 + $0x8] sm:$0xff] %vm185_vm1, %v192_v5  }
  0x28   :  { %v199_v7 = vld [vmem:[#allocation0 + $0x80] ss:$8 sm:$0xf0]   ;;  %v326_v12 = vld [vmem:[#allocation0 + $0x1] ss:$8 sm:$0xf0]  }
  0x29   :  { %287 = vrot.lane.b32.xlu0 %v286_v57, %s467_s0  ;;  %v201_v9 = vsel %vm183_vm0, %v199_v7, %v197_v6  ;;  %v181_v10 = vld [vmem:[#allocation0] ss:$8 sm:$0xf]   ;;  %v328_v16 = vsel %vm183_vm0, %v326_v12, %v324_v4  ;;  %v358_v17 = vld [vmem:[#allocation0 + $0xa1] ss:$8 sm:$0xf]  }
  0x2a   :  { %v182_v11 = vld [vmem:[#allocation0] ss:$8 sm:$0xf0]   ;;  %445 = vst.msk [vmem:[%s688_s1 + $0x10] sm:$0xff] %vm185_vm1, %v201_v9  }
  0x2b   :  { %v184_v13 = vsel %vm183_vm0, %v182_v11, %v181_v10  ;;  %v215_v14 = vld [vmem:[#allocation0 + $0x100] ss:$8 sm:$0xf]   ;;  %318 = vrot.lane.b32.xlu1 %v317_v60, %s467_s0  ;;  %v360_v18 = vld [vmem:[#allocation0 + $0xa1] ss:$8 sm:$0xf0]  }
  0x2c   :  { %186 = vst.msk [vmem:[%s688_s1] sm:$0xff] %vm185_vm1, %v184_v13   ;;  %447 = vst.msk [vmem:[%s688_s1 + $0x20] sm:$0xf] %vm185_vm1, %v215_v14   ;;  %v347_v19 = vld [vmem:[#allocation0 + $0x61] ss:$8 sm:$0xf]   ;;  %v362_v21 = vsel %vm183_vm0, %v360_v18, %v358_v17 }
  0x2d   :  { %311 = vrot.lane.b32.xlu0 %v310_v8, %s467_s0  ;;  %v349_v20 = vld [vmem:[#allocation0 + $0x61] ss:$8 sm:$0xf0]  }
  0x2e   :  { %v351_v22 = vsel %vm183_vm0, %v349_v20, %v347_v19  ;;  %v369_v23 = vld [vmem:[#allocation0 + $0xe1] ss:$8 sm:$0xf]  }
  0x2f   :  { %339 = vrot.lane.b32.xlu1 %v338_v15, %s468_s2 }
  0x31   :  { %329 = vrot.lane.b32.xlu0 %v328_v16, %s468_s2 }
  0x33   :  { %363 = vrot.lane.b32.xlu1 %v362_v21, %s468_s2 }
  0x35   :  { %352 = vrot.lane.b32.xlu0 %v351_v22, %s468_s2 }
  0x39   :  { %370 = vrot.lane.b32.xlu0 %v369_v23, %s468_s2 }
  0x85   :  { %v267_v24 = vpop.permute.xlu0 %266  }
  0x86   :  { %452 = vst.msk [vmem:[%s688_s1 + $0x1c] sm:$0xf] %vm227_vm2, %v267_v24  }
  0x8a   :  { %v249_v25 = vpop.permute.xlu1 %248  }
  0x8b   :  { %450 = vst.msk [vmem:[%s688_s1 + $0xc] sm:$0xff] %vm227_vm2, %v249_v25  }
  0x8d   :  { %v226_v26 = vpop.permute.xlu0 %225  }
  0x8e   :  { %228 = vst.msk [vmem:[%s688_s1] sm:$0xff] %vm227_vm2, %v226_v26  }
  0x91   :  { %v260_v27 = vpop.permute.xlu1 %259  }
  0x92   :  { %451 = vst.msk [vmem:[%s688_s1 + $0x14] sm:$0xff] %vm227_vm2, %v260_v27  }
  0x95   :  { %v278_v28 = vpop.permute.xlu1 %277  }
  0x96   :  { %280 = vst.msk [vmem:[%s688_s1] sm:$0xff] %vm279_vm3, %v278_v28  }
  0x97   :  { %v236_v29 = vpop.permute.xlu0 %235  }
  0x98   :  { %448 = vst.msk [vmem:[%s688_s1 + $0x20] sm:$0xf] %vm227_vm2, %v236_v29   ;;  %449 = vst.msk [vmem:[%s688_s1 + $0x4] sm:$0xf0] %vm227_vm2, %v236_v29  }
  0x99   :  { %v301_v30 = vpop.permute.xlu1 %300  }
  0x9a   :  { %455 = vst.msk [vmem:[%s688_s1 + $0xc] sm:$0xff] %vm279_vm3, %v301_v30  }
  0x9b   :  { %v288_v31 = vpop.permute.xlu0 %287  }
  0x9c   :  { %453 = vst.msk [vmem:[%s688_s1 + $0x20] sm:$0xf] %vm279_vm3, %v288_v31   ;;  %454 = vst.msk [vmem:[%s688_s1 + $0x4] sm:$0xf0] %vm279_vm3, %v288_v31  }
  0x9d   :  { %v319_v32 = vpop.permute.xlu1 %318  }
  0x9e   :  { %457 = vst.msk [vmem:[%s688_s1 + $0x1c] sm:$0xf] %vm279_vm3, %v319_v32  }
  0x9f   :  { %v312_v33 = vpop.permute.xlu0 %311  }
  0xa0   :  { %456 = vst.msk [vmem:[%s688_s1 + $0x14] sm:$0xff] %vm279_vm3, %v312_v33  }
  0xa1   :  { %v340_v34 = vpop.permute.xlu1 %339  }
  0xa2   :  { %458 = vst.msk [vmem:[%s688_s1 + $0x20] sm:$0xf] %vm331_vm4, %v340_v34   ;;  %459 = vst.msk [vmem:[%s688_s1 + $0x4] sm:$0xf0] %vm331_vm4, %v340_v34  }
  0xa3   :  { %v330_v35 = vpop.permute.xlu0 %329  }
  0xa4   :  { %332 = vst.msk [vmem:[%s688_s1] sm:$0xff] %vm331_vm4, %v330_v35  }
  0xa5   :  { %v364_v36 = vpop.permute.xlu1 %363  }
  0xa6   :  { %461 = vst.msk [vmem:[%s688_s1 + $0x14] sm:$0xff] %vm331_vm4, %v364_v36  }
  0xa7   :  { %v353_v37 = vpop.permute.xlu0 %352  }
  0xa8   :  { %460 = vst.msk [vmem:[%s688_s1 + $0xc] sm:$0xff] %vm331_vm4, %v353_v37  }
  0xab   :  { %v371_v38 = vpop.permute.xlu0 %370  }
  0xac   :  { %462 = vst.msk [vmem:[%s688_s1 + $0x1c] sm:$0xf] %vm331_vm4, %v371_v38  }

// kernel: tile.14
= control target key start
LH: loop header
LB: loop body
LE: loop exit
PB: predicated region body
PF: predicated region fallthrough
CT: control target
= control target key end

     0   :  { %s133_s10 = smov 120   ;;  %s134_s11 = smov 104   ;;  %vm3_vm0 = vcmask 64512   ;;  %vm9_vm1 = vcmask 1048512   ;;  %vm15_vm2 = vcmask 982912   ;;  %vm21_vm3 = vcmask 917312   ;;  %s209_s0 = inlined_call_operand.vmem [shape: f32[16,8], index: 0, kind: input, shape index: {}]   ;;  %s210_s1 = inlined_call_operand.vmem [shape: f32[1,128], index: 1, kind: output, shape index: {}]  }
   0x1   :  { %v103_v0 = vld [vmem:[%s209_s0 + $0xf] sm:$0x1]   ;;  %v105_v1 = vld [vmem:[%s209_s0 + $0xd] sm:$0x1]   ;;  %v104_v2 = vld [vmem:[%s209_s0 + $0xe] sm:$0x1]  }
   0x2   :  { %7 = vrot.lane.b32.xlu0 %v103_v0, %s133_s10  ;;  %19 = vrot.lane.b32.xlu1 %v105_v1, %s134_s11  ;;  %v106_v3 = vld [vmem:[%s209_s0 + $0xc] sm:$0x1]   ;;  %s135_s16 = smov 112   ;;  %s136_s17 = smov 96   ;;  %v107_v4 = vld [vmem:[%s209_s0 + $0xb] sm:$0x1]  }
   0x3   :  { %v108_v5 = vld [vmem:[%s209_s0 + $0xa] sm:$0x1]   ;;  %v2_v6 = vld [vmem:[%s209_s0] sm:$0x1]   ;;  %s137_s24 = smov 88   ;;  %s138_s25 = smov 80  }
   0x4   :  { %4 = vst.msk [vmem:[#allocation0] sm:$0x1] %vm3_vm0, %v2_v6   ;;  %v109_v7 = vld [vmem:[%s209_s0 + $0x9] sm:$0x1]   ;;  %v110_v8 = vld [vmem:[%s209_s0 + $0x8] sm:$0x1]  }
   0x5   :  { %s139_s30 = smov 72   ;;  %s140_s2 = smov 64   ;;  %v111_v9 = vld [vmem:[%s209_s0 + $0x7] sm:$0x1]   ;;  %v112_v10 = vld [vmem:[%s209_s0 + $0x6] sm:$0x1]  }
   0x6   :  { %13 = vrot.lane.b32.xlu0 %v104_v2, %s135_s16  ;;  %25 = vrot.lane.b32.xlu1 %v106_v3, %s136_s17  ;;  %s141_s7 = smov 56   ;;  %s142_s8 = smov 48   ;;  %v113_v11 = vld [vmem:[%s209_s0 + $0x5] sm:$0x1]   ;;  %v114_v12 = vld [vmem:[%s209_s0 + $0x4] sm:$0x1]  }
   0x7   :  { %s143_s13 = smov 40   ;;  %s144_s14 = smov 32   ;;  %v115_v13 = vld [vmem:[%s209_s0 + $0x3] sm:$0x1]   ;;  %v116_v14 = vld [vmem:[%s209_s0 + $0x2] sm:$0x1]  }
   0x8   :  { %s145_s19 = smov 24   ;;  %s146_s20 = smov 16   ;;  %v117_v15 = vld [vmem:[%s209_s0 + $0x1] sm:$0x1]   ;;  %vm27_vm4 = vcmask 851712   ;;  %vm33_vm5 = vcmask 786112  }
   0x9   :  { %s147_s0 = smov 8   ;;  %vm39_vm6 = vcmask 720512   ;;  %vm45_vm7 = vcmask 654912   ;;  %vm51_vm8 = vcmask 589312   ;;  %vm57_vm9 = vcmask 523712  }
   0xa   :  { %31 = vrot.lane.b32.xlu0 %v107_v4, %s137_s24  ;;  %37 = vrot.lane.b32.xlu1 %v108_v5, %s138_s25  ;;  %vm63_vm10 = vcmask 458112   ;;  %vm69_vm11 = vcmask 392512   ;;  %vm75_vm12 = vcmask 326912   ;;  %vm81_vm13 = vcmask 261312  }
   0xb   :  { %vm87_vm14 = vcmask 195712   ;;  %vm93_vm15 = vcmask 130112  }
   0xe   :  { %43 = vrot.lane.b32.xlu0 %v109_v7, %s139_s30  ;;  %49 = vrot.lane.b32.xlu1 %v110_v8, %s140_s2 }
  0x12   :  { %55 = vrot.lane.b32.xlu0 %v111_v9, %s141_s7  ;;  %61 = vrot.lane.b32.xlu1 %v112_v10, %s142_s8 }
  0x16   :  { %67 = vrot.lane.b32.xlu0 %v113_v11, %s143_s13  ;;  %73 = vrot.lane.b32.xlu1 %v114_v12, %s144_s14 }
  0x1a   :  { %79 = vrot.lane.b32.xlu0 %v115_v13, %s145_s19  ;;  %85 = vrot.lane.b32.xlu1 %v116_v14, %s146_s20 }
  0x1e   :  { %91 = vrot.lane.b32.xlu0 %v117_v15, %s147_s0 }
  0x74   :  { %v8_v16 = vpop.permute.xlu0 %7   ;;  %v20_v17 = vpop.permute.xlu1 %19  }
  0x75   :  { %10 = vst.msk [vmem:[#allocation0] sm:$0x1] %vm9_vm1, %v8_v16  }
  0x78   :  { %v14_v18 = vpop.permute.xlu0 %13   ;;  %v26_v19 = vpop.permute.xlu1 %25  }
  0x79   :  { %16 = vst.msk [vmem:[#allocation0] sm:$0x1] %vm15_vm2, %v14_v18  }
  0x7a   :  { %22 = vst.msk [vmem:[#allocation0] sm:$0x1] %vm21_vm3, %v20_v17  }
  0x7b   :  { %28 = vst.msk [vmem:[#allocation0] sm:$0x1] %vm27_vm4, %v26_v19  }
  0x7c   :  { %v32_v20 = vpop.permute.xlu0 %31   ;;  %v38_v21 = vpop.permute.xlu1 %37  }
  0x7d   :  { %34 = vst.msk [vmem:[#allocation0] sm:$0x1] %vm33_vm5, %v32_v20  }
  0x7e   :  { %40 = vst.msk [vmem:[#allocation0] sm:$0x1] %vm39_vm6, %v38_v21  }
  0x80   :  { %v44_v22 = vpop.permute.xlu0 %43   ;;  %v50_v23 = vpop.permute.xlu1 %49  }
  0x81   :  { %46 = vst.msk [vmem:[#allocation0] sm:$0x1] %vm45_vm7, %v44_v22  }
  0x82   :  { %52 = vst.msk [vmem:[#allocation0] sm:$0x1] %vm51_vm8, %v50_v23  }
  0x84   :  { %v56_v24 = vpop.permute.xlu0 %55   ;;  %v62_v25 = vpop.permute.xlu1 %61  }
  0x85   :  { %58 = vst.msk [vmem:[#allocation0] sm:$0x1] %vm57_vm9, %v56_v24  }
  0x86   :  { %64 = vst.msk [vmem:[#allocation0] sm:$0x1] %vm63_vm10, %v62_v25  }
  0x88   :  { %v68_v26 = vpop.permute.xlu0 %67   ;;  %v74_v27 = vpop.permute.xlu1 %73  }
  0x89   :  { %70 = vst.msk [vmem:[#allocation0] sm:$0x1] %vm69_vm11, %v68_v26  }
  0x8a   :  { %76 = vst.msk [vmem:[#allocation0] sm:$0x1] %vm75_vm12, %v74_v27  }
  0x8c   :  { %v80_v28 = vpop.permute.xlu0 %79   ;;  %v86_v29 = vpop.permute.xlu1 %85  }
  0x8d   :  { %82 = vst.msk [vmem:[#allocation0] sm:$0x1] %vm81_vm13, %v80_v28  }
  0x8e   :  { %88 = vst.msk [vmem:[#allocation0] sm:$0x1] %vm87_vm14, %v86_v29  }
  0x90   :  { %v92_v30 = vpop.permute.xlu0 %91  }
  0x91   :  { %94 = vst.msk [vmem:[#allocation0] sm:$0x1] %vm93_vm15, %v92_v30  }
  0x98   :  { %v99_v31 = vld [vmem:[#allocation0] sm:$0x1] }
  0x99   :  { %102 = vst [vmem:[%s210_s1] sm:$0x1] %v99_v31 }

// kernel: dcgan_upconv_forward.2
= control target key start
LH: loop header
LB: loop body
LE: loop exit
PB: predicated region body
PF: predicated region fallthrough
CT: control target
= control target key end

     0   :  { %s831_s15 = smov 0   ;;  %s948_s0 = inlined_call_operand.vmem [shape: bf16[128,144], index: 0, kind: input, shape index: {}]   ;;  %s949_s1 = inlined_call_operand.vmem [shape: bf16[144,128], index: 1, kind: input, shape index: {}]   ;;  %s950_s2 = inlined_call_operand.vmem [shape: bf16[128,128], index: 2, kind: output, shape index: {0}]   ;;  %s951_s3 = inlined_call_operand.vmem [shape: f32[2,1,128], index: 3, kind: output, shape index: {1}]   ;;  %s952_s4 = inlined_call_operand.vmem [shape: f32[2,1,128], index: 4, kind: output, shape index: {2}]  }
   0x1 LB: > { %s837_s16 = sadd.s32 4294967295, %s803_s15   ;;  %p670_p0 = scmp.ge.s32.totalorder %s803_s15, 1  ;;  %s803_s15 = sphi %s831_s15, %s15_s15  }
   0x2   : > { %p169_p1 = scmp.lt.s32.totalorder %s803_s15, 3 }
   0x4   : > { %p170_p2 = pnand %p670_p0, %p169_p1 }
   0x5   : > { %s671_s19 = sshll.u32 (!%p170_p2), %s837_s16, 3  ;;  %s705_s14 = sshll.u32 (!%p170_p2), %s837_s16, 6 }
   0x6   : > { %173 = sbr.rel (%p170_p2) target bundleno = 309 (0x135), region = 28  ;;  %p203_p3 = scmp.lt.s32.totalorder (!%p170_p2), %s671_s19, 15 }
   0x7   : > { %s457_s17 = ssub.s32 (!%p170_p2), 128, %s705_s14  ;;  %p215_p6 = scmp.lt.s32.totalorder (!%p170_p2), %s837_s16, 1 }
   0x8   : > { %p458_p4 = scmp.lt.s32.totalorder (!%p170_p2), %s457_s17, 64  ;;  %p706_p5 = scmp.gt.s32.totalorder (!%p170_p2), %s457_s17, 1 }
   0xb   : > { %v774_v0 = vld [vmem:[%s949_s1 + $0x38] sm:$0xff]   ;;  %v805_v1 = vmov 0   ;;  %v775_v2 = vld [vmem:[%s949_s1 + $0x30] sm:$0xff]   ;;  %s954_s19 = smov (!%p203_p3, %s671_s19), 15  ;;  %v776_v3 = vld [vmem:[%s949_s1 + $0x28] sm:$0xff]   ;;  %vm338_vm0 = vcmask 130048   ;;  %v479_v45 = vlaneseq  ;;  %v488_v54 = vstv %s705_s14 }
   0xc   : > { %351 = vmatprep.subr.bf16.mxu0 %v805_v1  ;;  %747 = vmatprep.subr.bf16.mxu1 %v805_v1  ;;  %s713_s24 = sshll.u32 %s954_s19, 3  ;;  %v777_v4 = vld [vmem:[%s949_s1 + $0x20] sm:$0xff]   ;;  %v778_v7 = vld [vmem:[%s949_s1 + $0x18] sm:$0xff]   ;;  %v779_v8 = vld [vmem:[%s949_s1 + $0x10] sm:$0xff]   ;;  %s675_s18 = sshll.u32 %s954_s19, 2 }
   0xd   : > { %352 = vmatpush1.bf16.msra.mxu0 %v774_v0  ;;  %756 = vmatpush1.bf16.msra.mxu1 %v774_v0  ;;  %s857_s27 = scalar_lea.vmem %s948_s0, %s713_s24  ;;  %v780_v9 = vld [vmem:[%s949_s1 + $0x8] sm:$0xff]   ;;  %v781_v10 = vld [vmem:[%s949_s1] sm:$0xff]   ;;  %s213_s23 = scalar_lea.vmem %s950_s2, %s675_s18  ;;  %v480_v48 = vshrl.u32 %v479_v45, 7 }
   0xe   : > { %353 = vmatprep.subr.bf16.mxu0 %v805_v1  ;;  %748 = vmatprep.subr.bf16.mxu1 %v805_v1  ;;  %v785_v5 = vld [vmem:[%s857_s27 + $0x4] ss:$8 sps:$4 sm:$0xff]   ;;  %v783_v12 = vld [vmem:[%s857_s27] ss:$8 sps:$4 sm:$0xff]   ;;  %v789_v14 = vld [vmem:[%s857_s27 + $0x14] ss:$8 sps:$4 sm:$0xff]  }
   0xf   : > { %v788_v6 = vld [vmem:[%s857_s27 + $0x24] ss:$8 sps:$4 sm:$0xff]   ;;  %693 = vmatprep.mubr.msk.bf16.mxu0 %vm338_vm0, %v785_v5  ;;  %v786_v13 = vld [vmem:[%s857_s27 + $0x20] ss:$8 sps:$4 sm:$0xff]   ;;  %v792_v15 = vld [vmem:[%s857_s27 + $0x34] ss:$8 sps:$4 sm:$0xff]   ;;  %v489_v59 = vadd.s32 %v488_v54, %v480_v48 }
  0x10   : > { %695 = vmatprep.mubr.msk.bf16.mxu1 %vm338_vm0, %v788_v6  ;;  %v782_v11 = vld [vmem:[%s949_s1 + $0x40] sm:$0xff]   ;;  %v791_v16 = vld [vmem:[%s857_s27 + $0x10] ss:$8 sps:$4 sm:$0xff]   ;;  %s459_s20 = scalar_select %p458_p4, %s457_s17, 64  ;;  %v481_v51 = vadd.s32 8, %v480_v48  ;;  %v482_v53 = vadd.s32 16, %v480_v48 }
  0x11   : > { %354 = vmatpush1.bf16.msra.mxu0 %v775_v2  ;;  %757 = vmatpush1.bf16.msra.mxu1 %v775_v2  ;;  %v794_v17 = vld [vmem:[%s857_s27 + $0x30] ss:$8 sps:$4 sm:$0xff]   ;;  %s926_s24 = scalar_select %p215_p6, %s837_s16, 1  ;;  %v483_v56 = vadd.s32 24, %v480_v48  ;;  %v484_v58 = vadd.s32 32, %v480_v48  ;;  %v485_v0 = vadd.s32 40, %v480_v48 }
  0x12   : > { %355 = vmatprep.subr.bf16.mxu0 %v805_v1  ;;  %749 = vmatprep.subr.bf16.mxu1 %v805_v1  ;;  %s956_s20 = smov (!%p706_p5, %s459_s20), 1  ;;  %v490_v60 = vadd.s32 %v488_v54, %v481_v51  ;;  %v491_v62 = vadd.s32 %v488_v54, %v482_v53  ;;  %v486_v2 = vadd.s32 48, %v480_v48  ;;  %vm497_vm1 = vcmp.lt.s32.totalorder %v489_v59, 128 }
  0x13   : > { %s462_s19 = scvt.s32.f32 %s956_s20  ;;  %s217_s27 = scalar_lea.vmem %s951_s3, %s926_s24 }
  0x14   : > { %vm498_vm2 = vcmp.lt.s32.totalorder %v490_v60, 128  ;;  %vm499_vm3 = vcmp.lt.s32.totalorder %v491_v62, 128  ;;  %s220_s29 = scalar_lea.vmem %s952_s4, %s926_s24 }
  0x15   : > { %356 = vmatpush1.bf16.msra.mxu0 %v776_v3  ;;  %758 = vmatpush1.bf16.msra.mxu1 %v776_v3  ;;  %v476_v42 = vstv %s462_s19  ;;  %v493_v3 = vadd.s32 %v488_v54, %v484_v58 }
  0x16   : > { %357 = vmatprep.subr.bf16.mxu0 %v805_v1  ;;  %750 = vmatprep.subr.bf16.mxu1 %v805_v1  ;;  %795 = vrcp.f32 %v476_v42 }
  0x17   : > { %vm501_vm5 = vcmp.lt.s32.totalorder %v493_v3, 128 }
  0x19   : > { %358 = vmatpush1.bf16.msra.mxu0 %v777_v4  ;;  %759 = vmatpush1.bf16.msra.mxu1 %v777_v4 }
  0x1a   : > { %359 = vmatprep.subr.bf16.mxu0 %v805_v1  ;;  %751 = vmatprep.subr.bf16.mxu1 %v805_v1 }
  0x1d   : > { %360 = vmatpush1.bf16.msra.mxu0 %v778_v7  ;;  %760 = vmatpush1.bf16.msra.mxu1 %v778_v7  ;;  %v487_v7 = vadd.s32 56, %v480_v48 }
  0x1e   : > { %361 = vmatprep.subr.bf16.mxu0 %v805_v1  ;;  %752 = vmatprep.subr.bf16.mxu1 %v805_v1 }
  0x21   : > { %362 = vmatpush1.bf16.msra.mxu0 %v779_v8  ;;  %761 = vmatpush1.bf16.msra.mxu1 %v779_v8 }
  0x22   : > { %363 = vmatprep.subr.bf16.mxu0 %v805_v1  ;;  %753 = vmatprep.subr.bf16.mxu1 %v805_v1 }
  0x23   : > { %v796_v57 = vpop.eup %795 }
  0x25   : > { %364 = vmatpush1.bf16.msra.mxu0 %v780_v9  ;;  %762 = vmatpush1.bf16.msra.mxu1 %v780_v9  ;;  %v494_v9 = vadd.s32 %v488_v54, %v485_v0 }
  0x26   : > { %365 = vmatprep.subr.bf16.mxu0 %v805_v1  ;;  %754 = vmatprep.subr.bf16.mxu1 %v805_v1 }
  0x27   : > { %vm502_vm6 = vcmp.lt.s32.totalorder %v494_v9, 128 }
  0x29   : > { %366 = vmatpush1.bf16.msra.mxu0 %v781_v10  ;;  %763 = vmatpush1.bf16.msra.mxu1 %v781_v10 }
  0x2a   : > { %381 = vmatprep.subr.bf16.mxu0 %v805_v1  ;;  %755 = vmatprep.subr.bf16.mxu1 %v805_v1  ;;  %v492_v1 = vadd.s32 %v488_v54, %v483_v56 }
  0x2c   : > { %vm500_vm4 = vcmp.lt.s32.totalorder %v492_v1, 128 }
  0x2d   : > { %382 = vmatpush2.bf16.msra.mxu0 %v782_v11  ;;  %764 = vmatpush2.bf16.msra.mxu1 %v782_v11 }
  0x30   : > { %384 = vmatmul.mubr.bf16.vlgmr.msra.gmra.mxu0 %v783_v12  ;;  %400 = vmatmul.mubr.bf16.vlgmr.msra.gmra.mxu1 %v786_v13 }
  0x31   : > { %694 = vmatprep.mubr.msk.bf16.mxu0 %vm338_vm0, %v789_v14  ;;  %696 = vmatprep.mubr.msk.bf16.mxu1 %vm338_vm0, %v792_v15  ;;  %v495_v14 = vadd.s32 %v488_v54, %v486_v2 }
  0x33   : > { %vm503_vm7 = vcmp.lt.s32.totalorder %v495_v14, 128 }
  0x38   : > { %392 = vmatmul.mubr.bf16.gmra.mxu0 %v791_v16  ;;  %408 = vmatmul.mubr.bf16.gmra.mxu1 %v794_v17 }
  0xf0   : > { %v892_v18 = vpop.f32.mrf.mxu0  ;;  %v894_v19 = vpop.f32.mrf.mxu1 }
  0xf2   : > { %v387_v20 = vpop.f32.mrf.mxu0  ;;  %v403_v21 = vpop.f32.mrf.mxu1 }
  0xf3   : > { %v496_v20 = vadd.s32 %v488_v54, %v487_v7 }
  0xf4   : > { %v900_v22 = vpop.f32.mrf.mxu0  ;;  %v902_v23 = vpop.f32.mrf.mxu1 }
  0xf5   : > { %v727_v24 = vpack.c.bf16 %v900_v22, %v892_v18  ;;  %v737_v25 = vpack.c.bf16 %v902_v23, %v894_v19  ;;  %v463_v30 = vadd.f32 %v900_v22, %v892_v18  ;;  %vm504_vm8 = vcmp.lt.s32.totalorder %v496_v20, 128 }
  0xf6   : > { %v390_v26 = vpop.f32.mrf.mxu0  ;;  %v406_v27 = vpop.f32.mrf.mxu1 }
  0xf7   : > { %728 = vst [vmem:[%s213_s23] sm:$0xff] %v727_v24   ;;  %745 = vst [vmem:[%s213_s23 + $0x10] sm:$0xff] %v737_v25  }
  0xf8   : > { %v908_v28 = vpop.f32.mrf.mxu0  ;;  %v910_v29 = vpop.f32.mrf.mxu1 }
  0xf9   : > { %v464_v33 = vadd.f32 %v463_v30, %v908_v28 }
  0xfa   : > { %v395_v31 = vpop.f32.mrf.mxu0  ;;  %v411_v32 = vpop.f32.mrf.mxu1 }
  0xfc   : > { %v396_v34 = vpop.f32.mrf.mxu0  ;;  %v915_v35 = vpop.f32.mrf.mxu1 }
  0xfd   : > { %v732_v36 = vpack.c.bf16 %v396_v34, %v908_v28  ;;  %v465_v37 = vadd.f32 %v464_v33, %v396_v34  ;;  %v742_v38 = vpack.c.bf16 %v915_v35, %v910_v29 }
  0xfe   : > { %v398_v39 = vpop.f32.mrf.mxu0  ;;  %v414_v40 = vpop.f32.mrf.mxu1 }
  0xff   : > { %744 = vst [vmem:[%s213_s23 + $0x8] sm:$0xff] %v732_v36   ;;  %v466_v41 = vadd.f32 %v465_v37, %v894_v19  ;;  %746 = vst [vmem:[%s213_s23 + $0x18] sm:$0xff] %v742_v38  }
 0x101   : > { %v467_v43 = vadd.f32 %v466_v41, %v902_v23 }
 0x103   : > { %v468_v44 = vadd.f32 %v467_v43, %v910_v29 }
 0x105   : > { %v469_v46 = vadd.f32 %v468_v44, %v915_v35 }
 0x107   : > { %v470_v47 = vrot.slane %v469_v46, 4 }
 0x109   : > { %v471_v49 = vadd.f32 %v470_v47, %v469_v46 }
 0x10b   : > { %v472_v50 = vrot.slane %v471_v49, 2 }
 0x10d   : > { %v473_v52 = vadd.f32 %v472_v50, %v471_v49 }
 0x10f   : > { %v474_v55 = vrot.slane %v473_v52, 1 }
 0x111   : > { %v475_v61 = vadd.f32 %v474_v55, %v473_v52 }
 0x113   : > { %v478_v63 = vmul.f32 %v796_v57, %v475_v61  ;;  %537 = vst [vmem:[%s217_s27] sm:$0x1] %v475_v61 }
 0x115   : > { %v505_v4 = vsub.f32 %v892_v18, %v478_v63  ;;  %v506_v5 = vsub.f32 %v900_v22, %v478_v63  ;;  %v507_v6 = vsub.f32 %v908_v28, %v478_v63  ;;  %v508_v8 = vsub.f32 %v396_v34, %v478_v63 }
 0x116   : > { %v509_v12 = vsub.f32 %v894_v19, %v478_v63  ;;  %v510_v17 = vsub.f32 %v902_v23, %v478_v63  ;;  %v511_v24 = vsub.f32 %v910_v29, %v478_v63  ;;  %v512_v19 = vsub.f32 %v915_v35, %v478_v63 }
 0x117   : > { %v529_v10 = vsel %vm497_vm1, %v505_v4, 0.0  ;;  %v530_v11 = vsel %vm498_vm2, %v506_v5, 0.0  ;;  %v531_v13 = vsel %vm499_vm3, %v507_v6, 0.0  ;;  %v532_v18 = vsel %vm500_vm4, %v508_v8, 0.0 }
 0x118   : > { %v538_v15 = vmul.f32 %v529_v10, %v529_v10  ;;  %v539_v16 = vmul.f32 %v530_v11, %v530_v11  ;;  %v540_v21 = vmul.f32 %v531_v13, %v531_v13  ;;  %v533_v25 = vsel %vm501_vm5, %v509_v12, 0.0 }
 0x119   : > { %v541_v26 = vmul.f32 %v532_v18, %v532_v18  ;;  %v534_v28 = vsel %vm502_vm6, %v510_v17, 0.0  ;;  %v542_v30 = vmul.f32 %v533_v25, %v533_v25  ;;  %v535_v32 = vsel %vm503_vm7, %v511_v24, 0.0 }
 0x11a   : > { %v546_v22 = vadd.f32 %v539_v16, %v538_v15  ;;  %v543_v23 = vmul.f32 %v534_v28, %v534_v28  ;;  %v536_v34 = vsel %vm504_vm8, %v512_v19, 0.0  ;;  %v544_v36 = vmul.f32 %v535_v32, %v535_v32 }
 0x11b   : > { %v545_v38 = vmul.f32 %v536_v34, %v536_v34 }
 0x11c   : > { %v547_v27 = vadd.f32 %v546_v22, %v540_v21 }
 0x11e   : > { %v548_v31 = vadd.f32 %v547_v27, %v541_v26 }
 0x120   : > { %v549_v33 = vadd.f32 %v548_v31, %v542_v30 }
 0x122   : > { %v550_v37 = vadd.f32 %v549_v33, %v543_v23 }
 0x124   : > { %v551_v39 = vadd.f32 %v550_v37, %v544_v36 }
 0x126   : > { %v552_v29 = vadd.f32 %v551_v39, %v545_v38 }
 0x128   : > { %v553_v40 = vrot.slane %v552_v29, 4 }
 0x12a   : > { %v554_v41 = vadd.f32 %v553_v40, %v552_v29 }
 0x12c   : > { %v555_v42 = vrot.slane %v554_v41, 2 }
 0x12e   : > { %v556_v43 = vadd.f32 %v555_v42, %v554_v41 }
 0x130   : > { %v557_v44 = vrot.slane %v556_v43, 1 }
 0x132   : > { %v558_v35 = vadd.f32 %v557_v44, %v556_v43 }
 0x134   : > { %559 = vst [vmem:[%s220_s29] sm:$0x1] %v558_v35 }
 0x135 PF: > { %s15_s15 = sadd.s32 1, %s803_s15  }
 0x136   : > { %p12_p7 = scmp.ge.s32.totalorder %s15_s15, 4  }
 0x138   :  { %14 = sbr.rel (!%p12_p7) target bundleno = 1 (0x1), region = 82 }

// kernel: dcgan_upconv_forward.3
= control target key start
LH: loop header
LB: loop body
LE: loop exit
PB: predicated region body
PF: predicated region fallthrough
CT: control target
= control target key end

     0   :  { %s447_s12 = smov 0   ;;  %s477_s0 = inlined_call_operand.vmem [shape: bf16[128,128], index: 0, kind: input, shape index: {}, may-alias: {0,3}]   ;;  %s478_s1 = inlined_call_operand.vmem [shape: f32[1,128], index: 1, kind: input, shape index: {}]   ;;  %s479_s2 = inlined_call_operand.vmem [shape: f32[1,128], index: 2, kind: input, shape index: {}]   ;;  %s480_s3 = inlined_call_operand.vmem [shape: bf16[128,128], index: 3, kind: output, shape index: {}, may-alias: {0,3}]  }
   0x1 LB: > { %s340_s13 = sadd.s32 4294967295, %s425_s12   ;;  %p344_p0 = scmp.ge.s32.totalorder %s425_s12, 1  ;;  %s425_s12 = sphi %s447_s12, %s13_s12  }
   0x2   : > { %p138_p1 = scmp.lt.s32.totalorder %s425_s12, 3 }
   0x4   : > { %p139_p2 = pnand %p344_p0, %p138_p1 }
   0x5   : > { %s345_s14 = sshll.u32 (!%p139_p2), %s340_s13, 3 }
   0x6   : > { %142 = sbr.rel (%p139_p2) target bundleno = 32 (0x20), region = 32  ;;  %p163_p3 = scmp.lt.s32.totalorder (!%p139_p2), %s345_s14, 15 }
   0xb   : > { %s482_s14 = smov (!%p163_p3, %s345_s14), 15  ;;  %v349_v0 = vld [vmem:[%s478_s1] ss:$0 sm:$0xff] }
   0xc   : > { %s346_s15 = sshll.u32 %s482_s14, 2  ;;  %v350_v13 = vld [vmem:[%s479_s2] ss:$0 sm:$0xff] }
   0xd   : > { %s166_s18 = scalar_lea.vmem %s477_s0, %s346_s15  ;;  %s172_s25 = scalar_lea.vmem %s480_s3, %s346_s15 }
   0xe   : > { %v370_v1 = vld [vmem:[%s166_s18] sm:$0xff]   ;;  %v405_v2 = vld [vmem:[%s166_s18 + $0x8] sm:$0xff]   ;;  %v406_v3 = vld [vmem:[%s166_s18 + $0x10] sm:$0xff]  }
   0xf   : > { %v371_v4 = vunpack.c.l.bf16 %v370_v1  ;;  %v372_v5 = vunpack.c.h.bf16 %v370_v1  ;;  %v375_v6 = vunpack.c.l.bf16 %v405_v2  ;;  %v376_v7 = vunpack.c.h.bf16 %v405_v2  ;;  %v407_v8 = vld [vmem:[%s166_s18 + $0x18] sm:$0xff]  }
  0x10   : > { %v379_v9 = vunpack.c.l.bf16 %v406_v3  ;;  %v380_v10 = vunpack.c.h.bf16 %v406_v3  ;;  %v383_v11 = vunpack.c.l.bf16 %v407_v8  ;;  %v384_v12 = vunpack.c.h.bf16 %v407_v8 }
  0x11   : > { %v197_v14 = vmul.f32 %v371_v4, %v349_v0  ;;  %v198_v15 = vmul.f32 %v372_v5, %v349_v0  ;;  %v199_v16 = vmul.f32 %v375_v6, %v349_v0  ;;  %v200_v17 = vmul.f32 %v376_v7, %v349_v0 }
  0x12   : > { %v201_v18 = vmul.f32 %v379_v9, %v349_v0  ;;  %v202_v19 = vmul.f32 %v380_v10, %v349_v0  ;;  %v203_v20 = vmul.f32 %v383_v11, %v349_v0  ;;  %v204_v21 = vmul.f32 %v384_v12, %v349_v0 }
  0x13   : > { %v212_v22 = vadd.f32 %v350_v13, %v197_v14  ;;  %v213_v23 = vadd.f32 %v350_v13, %v198_v15  ;;  %v214_v24 = vadd.f32 %v350_v13, %v199_v16  ;;  %v215_v25 = vadd.f32 %v350_v13, %v200_v17 }
  0x14   : > { %v216_v26 = vadd.f32 %v350_v13, %v201_v18  ;;  %v217_v27 = vadd.f32 %v350_v13, %v202_v19  ;;  %v218_v28 = vadd.f32 %v350_v13, %v203_v20  ;;  %v219_v29 = vadd.f32 %v350_v13, %v204_v21 }
  0x15   : > { %vm220_vm0 = vcmp.ge.f32.partialorder %v212_v22, 0.0  ;;  %vm221_vm1 = vcmp.ge.f32.partialorder %v213_v23, 0.0  ;;  %v228_v30 = vmul.f32 0.2, %v212_v22  ;;  %v229_v31 = vmul.f32 0.2, %v213_v23 }
  0x16   : > { %vm222_vm2 = vcmp.ge.f32.partialorder %v214_v24, 0.0  ;;  %vm223_vm3 = vcmp.ge.f32.partialorder %v215_v25, 0.0  ;;  %v230_v32 = vmul.f32 0.2, %v214_v24  ;;  %v231_v33 = vmul.f32 0.2, %v215_v25 }
  0x17   : > { %v236_v34 = vsel %vm220_vm0, %v212_v22, %v228_v30  ;;  %v237_v35 = vsel %vm221_vm1, %v213_v23, %v229_v31  ;;  %vm224_vm4 = vcmp.ge.f32.partialorder %v216_v26, 0.0  ;;  %vm225_vm5 = vcmp.ge.f32.partialorder %v217_v27, 0.0 }
  0x18   : > { %v388_v36 = vpack.c.bf16 %v237_v35, %v236_v34  ;;  %v238_v37 = vsel %vm222_vm2, %v214_v24, %v230_v32  ;;  %v239_v38 = vsel %vm223_vm3, %v215_v25, %v231_v33  ;;  %v232_v39 = vmul.f32 0.2, %v216_v26 }
  0x19   : > { %v393_v40 = vpack.c.bf16 %v239_v38, %v238_v37  ;;  %v233_v41 = vmul.f32 0.2, %v217_v27  ;;  %vm226_vm6 = vcmp.ge.f32.partialorder %v218_v28, 0.0  ;;  %vm227_vm7 = vcmp.ge.f32.partialorder %v219_v29, 0.0 }
  0x1a   : > { %389 = vst [vmem:[%s172_s25] sm:$0xff] %v388_v36   ;;  %v240_v42 = vsel %vm224_vm4, %v216_v26, %v232_v39  ;;  %v234_v43 = vmul.f32 0.2, %v218_v28  ;;  %v235_v44 = vmul.f32 0.2, %v219_v29 }
  0x1b   : > { %408 = vst [vmem:[%s172_s25 + $0x8] sm:$0xff] %v393_v40   ;;  %v241_v45 = vsel %vm225_vm5, %v217_v27, %v233_v41 }
  0x1c   : > { %v398_v46 = vpack.c.bf16 %v241_v45, %v240_v42  ;;  %v242_v47 = vsel %vm226_vm6, %v218_v28, %v234_v43  ;;  %v243_v48 = vsel %vm227_vm7, %v219_v29, %v235_v44 }
  0x1d   : > { %v403_v49 = vpack.c.bf16 %v243_v48, %v242_v47 }
  0x1e   : > { %409 = vst [vmem:[%s172_s25 + $0x10] sm:$0xff] %v398_v46  }
  0x1f   : > { %410 = vst [vmem:[%s172_s25 + $0x18] sm:$0xff] %v403_v49  }
  0x20 PF: > { %s13_s12 = sadd.s32 1, %s425_s12  }
  0x21   : > { %p10_p4 = scmp.ge.s32.totalorder %s13_s12, 4  }
  0x23   :  { %12 = sbr.rel (!%p10_p4) target bundleno = 1 (0x1), region = 62 }

</bundles_post_ra>
